<compile_context>
chip_gen: v6e
topology: v6e:2x2x1
jax: 0.10.0
libtpu: 0.0.40
codegen_flags: <defaults>
</compile_context>

<pallas_src>
import jax
import jax.numpy as jnp
from jax.experimental import pallas as pl
from jax.experimental.pallas import tpu as pltpu


def _hbm_copy_kernel(x_hbm, o_hbm, sem):
    """Whole-array HBM -> HBM DMA; no VMEM staging, no grid."""
    cp = pltpu.make_async_copy(x_hbm, o_hbm, sem)
    cp.start()
    cp.wait()


def _materialized_passthrough(x: jax.Array) -> jax.Array:
    """Identity copy realized as a single HBM->HBM DMA (one pallas_call, grid=())."""
    return pl.pallas_call(
        _hbm_copy_kernel,
        out_shape=jax.ShapeDtypeStruct(x.shape, x.dtype),
        in_specs=[pl.BlockSpec(memory_space=pl.ANY)],
        out_specs=pl.BlockSpec(memory_space=pl.ANY),
        scratch_shapes=[pltpu.SemaphoreType.DMA(())],
    )(x)


_materialized_passthrough_jit = jax.jit(_materialized_passthrough)


def vocoder_forward(mel_spectrogram: jax.Array, *, materialize: bool = False) -> jax.Array:
    """Pallas implementation of Vocoder.forward.

    mel_spectrogram: (B, C, T) float32 in PyTorch NCT layout.

    The reference forward is a no-op, so the fastest correct implementation is
    to return the input unchanged (zero HBM traffic).  Pass materialize=True to
    force a fresh output buffer via a single HBM->HBM DMA Pallas kernel.
    """
    if not materialize:
        return mel_spectrogram
    return _materialized_passthrough_jit(mel_spectrogram)


if __name__ == "__main__":
    key = jax.random.PRNGKey(0)
    # Small, module-consistent shapes: batch=2, n_mels=8, time frames=16.
    B, C, T = 2, 8, 16
    mel = jax.random.normal(key, (B, C, T), dtype=jnp.float32)

    # Zero-cost default path (what production code should use).
    out_fast = vocoder_forward(mel)

    # Materialized Pallas path: run the kernel once and block on the result.
    out_kernel = vocoder_forward(mel, materialize=True)
    out_kernel = jax.block_until_ready(out_kernel)

    assert out_fast.shape == (B, C, T)
    assert out_kernel.shape == (B, C, T)
    assert bool(jnp.allclose(out_fast, mel))
    assert bool(jnp.allclose(out_kernel, mel))

    print("KERNEL_OK")
</pallas_src>

<mosaic_0001>
module attributes {stable_mosaic.version = 11 : i64} {
  func.func @_hbm_copy_kernel(%arg0: memref<2x8x16xf32, #tpu.memory_space<any>>, %arg1: memref<2x8x16xf32, #tpu.memory_space<any>>, %arg2: memref<!tpu.dma_semaphore, #tpu.memory_space<semaphore_mem>>) attributes {dimension_semantics = [], scalar_prefetch = 0 : i64, scratch_operands = 1 : i64, tpu.core_type = #tpu.core_type<tc>} {
    tpu.enqueue_dma source(%arg0 : memref<2x8x16xf32, #tpu.memory_space<any>>) target(%arg1 : memref<2x8x16xf32, #tpu.memory_space<any>>) target_semaphore(%arg2 : memref<!tpu.dma_semaphore, #tpu.memory_space<semaphore_mem>>)
    tpu.wait_dma2 semaphore(%arg2 : memref<!tpu.dma_semaphore, #tpu.memory_space<semaphore_mem>>) src(%arg0 : memref<2x8x16xf32, #tpu.memory_space<any>>) dst(%arg1 : memref<2x8x16xf32, #tpu.memory_space<any>>)
    return
  }
}

</mosaic_0001>

<bundles_post_ra>
// kernel: _materialized_passthrough.1
= control target key start
LH: loop header
LB: loop body
LE: loop exit
PB: predicated region body
PF: predicated region fallthrough
CT: control target
= control target key end

     0   :  { %s29_s6 = smov [#allocation2]   ;;  %s30_s7 = smov 131072   ;;  %s48_s0 = inlined_call_operand.hbm [shape: f32[2,8,16], index: 0, kind: input, shape index: {}]   ;;  %s49_s1 = inlined_call_operand.hbm [shape: f32[2,8,16], index: 1, kind: output, shape index: {}]  }
   0x1   :  { %s31_s8 = smov 0  }
   0x2   :  { %12 = dma.general %s48_s0, 256, %s49_s1, %s29_s6, %s30_s7, [#allocation4], %s31_s8, 0  }
   0x3   :  { %27 = dma.done.wait [#allocation2], 256 }
   0x4   :  { %28 = vsyncadd [#allocation2], 4294967040 }
   0x5   :  { %17 = vsyncmov [#allocation2] }
   0x8   :  { %s18_s13 = vpop.sfrf %17 }
   0x9   :  { %p23_p0 = scmp.ne.s32.totalorder %s18_s13, 0 }
   0xb   :  { %22 = shalt.err (%p23_p0)  }

</bundles_post_ra>
